<compile_context>
chip_gen: v6e
topology: v6e:2x2x1
jax: 0.10.0
libtpu: 0.0.40
codegen_flags: <defaults>
</compile_context>

<pallas_src>
import functools

import numpy as np
import jax
import jax.numpy as jnp
from jax import lax
from jax.experimental import pallas as pl
from jax.experimental.pallas import tpu as pltpu


# ---------------------------------------------------------------------------
# small helpers
# ---------------------------------------------------------------------------
def _mm(w, x):
    """(Co, Ci) @ (Ci, M) in f32. Tiny Ci -> VPU broadcast-accumulate, else MXU."""
    co, ci = w.shape
    if ci <= 8:
        acc = w[:, 0:1] * x[0:1, :]
        for i in range(1, ci):
            acc = acc + w[:, i:i + 1] * x[i:i + 1, :]
        return acc
    # TODO(synk): for realistic ShuffleNet widths (Cp>=58) cast operands to bf16 here.
    return jnp.dot(w, x, preferred_element_type=jnp.float32)


_TAPS = [(di, dj) for di in (-1, 0, 1) for dj in (-1, 0, 1)]   # row-major 3x3 taps


# ---------------------------------------------------------------------------
# Pallas kernel: one (Nb, C, H*W) block = Nb whole images, channel-major.
# ---------------------------------------------------------------------------
def _unit_kernel(x_ref, w1_ref, b1_ref, wdw_ref, mask_ref, w2_ref, b3_ref,
                 out_ref, *, H, W):
    Nb, C, HW = x_ref.shape
    Cp = C // 2

    # Loop-invariant loads / slices hoisted out of the per-image loop.
    w1 = w1_ref[...]                       # (Cp, Cp)  BN1 scale folded in
    b1 = b1_ref[...]                       # (Cp, 1)
    wdw = wdw_ref[...]                     # (Cp, 9)   BN2 scale folded in
    w2 = w2_ref[...]                       # (Cp, Cp)  BN3 scale folded in
    b3 = b3_ref[...]                       # (Cp, 1)   BN2+BN3 biases folded in
    masks = mask_ref[...]                  # (9, HW)   {0,1} spatial boundary masks
    mask_rows = [masks[k:k + 1, :] for k in range(9)]
    w_cols = [wdw[:, k:k + 1] for k in range(9)]

    # g=2 channel shuffle: out[j] = cat[src[j]], cat = [x1 ; branch(x2)]
    src_idx = [2 * j if j < Cp else 2 * (j - Cp) + 1 for j in range(C)]

    for n in range(Nb):                    # static unroll over images in this block
        x2 = x_ref[n, pl.ds(Cp, Cp), :].astype(jnp.float32)          # (Cp, HW)

        # --- 1x1 conv #1 (+ folded BN1) + ReLU --------------------------------
        y = jnp.maximum(_mm(w1, x2) + b1, 0.0)                       # (Cp, HW)

        # --- depthwise 3x3, stride 1, pad 1 (+ folded BN2 scale) --------------
        acc = y * w_cols[4]                # center tap, mask is all-ones
        for k, (di, dj) in enumerate(_TAPS):
            if di == 0 and dj == 0:
                continue
            d = di * W + dj                                  # flat-index offset
            sh = pltpu.roll(y, shift=(-d) % HW, axis=1)      # XLU, co-issues w/ VPU
            acc = acc + (sh * mask_rows[k]) * w_cols[k]

        # --- 1x1 conv #2 (+ folded BN2 bias, BN3) + ReLU ----------------------
        z = jnp.maximum(_mm(w2, acc) + b3, 0.0)                      # (Cp, HW)

        # --- fused concat([x1, z]) + g=2 channel shuffle: shuffled row stores --
        for j, s in enumerate(src_idx):
            if s < Cp:      # passthrough half (x1)
                out_ref[n, pl.ds(j, 1), :] = x_ref[n, pl.ds(s, 1), :].astype(out_ref.dtype)
            else:           # computed branch
                out_ref[n, pl.ds(j, 1), :] = z[s - Cp:s - Cp + 1, :].astype(out_ref.dtype)


# ---------------------------------------------------------------------------
# wrapper: BN folding, mask precompute, pallas_call
# ---------------------------------------------------------------------------
def _fold_bn(p, eps=1e-5):
    gamma, beta, mean, var = p
    scale = gamma / jnp.sqrt(var + eps)
    return scale, beta - mean * scale


def _boundary_masks(H, W):
    """(9, H*W) float32 {0,1}: valid positions for each 3x3 tap under zero padding."""
    rr, cc = np.meshgrid(np.arange(H), np.arange(W), indexing="ij")
    rr = rr.reshape(1, H * W)
    cc = cc.reshape(1, H * W)
    rows = []
    for di, dj in _TAPS:
        ok = np.ones((1, H * W), dtype=bool)
        if di == -1:
            ok &= rr >= 1
        if di == 1:
            ok &= rr <= H - 2
        if dj == -1:
            ok &= cc >= 1
        if dj == 1:
            ok &= cc <= W - 2
        rows.append(ok)
    return jnp.asarray(np.concatenate(rows, axis=0).astype(np.float32))


def _auto_images_per_block(N, C, HW, itemsize):
    """Biggest divisor of N that keeps >=2 grid steps (2-TC) and a small VMEM footprint."""
    budget = 4 * 1024 * 1024                   # conservative (v7x has 64 MiB physical)
    per_img = 2 * C * HW * itemsize            # input block + output block
    cap = max(1, budget // (2 * per_img))      # double buffered
    best = 1
    for nb in range(1, N + 1):
        if N % nb == 0 and nb <= cap and (N // nb >= 2 or N == 1):
            best = nb
    return best


def shufflenet_unit_forward(x_nchw, params, *, images_per_block=None):
    """ShufflenetUnit forward (stride=1, downsample=None). NCHW in/out, eval-mode BN."""
    N, C, H, W = x_nchw.shape
    Cp = C // 2
    HW = H * W

    if images_per_block is None:
        images_per_block = _auto_images_per_block(N, C, HW, x_nchw.dtype.itemsize)
    Nb = images_per_block
    assert N % Nb == 0, (N, Nb)

    # ---- fold all three BNs into the conv weights / two bias vectors ---------
    s1, b1 = _fold_bn(params["bn1"])
    s2, b2 = _fold_bn(params["bn2"])
    s3, b3 = _fold_bn(params["bn3"])

    W1 = params["w1"][:, :, 0, 0]                        # (Cp, Cp)  (out, in)
    W2 = params["w2"][:, :, 0, 0]                        # (Cp, Cp)
    DW = params["wdw"][:, 0, :, :].reshape(Cp, 9)        # (Cp, 9)   row-major 3x3 taps

    w1f = (s1[:, None] * W1).astype(jnp.float32)         # BN1 scale into conv1
    b1f = b1.reshape(Cp, 1).astype(jnp.float32)
    wdwf = (s2[:, None] * DW).astype(jnp.float32)        # BN2 scale into dwconv
    w2f = (s3[:, None] * W2).astype(jnp.float32)         # BN3 scale into conv2
    b3f = (b3 + s3 * (W2 @ b2)).reshape(Cp, 1).astype(jnp.float32)   # BN2 bias routed thru conv2

    tap_masks = _boundary_masks(H, W)                    # (9, HW)

    x_flat = x_nchw.reshape(N, C, HW)                    # free reshape, no transpose

    const2 = lambda i: (0, 0)
    kernel = functools.partial(_unit_kernel, H=H, W=W)

    out_flat = pl.pallas_call(
        kernel,
        out_shape=jax.ShapeDtypeStruct((N, C, HW), x_nchw.dtype),
        grid_spec=pltpu.PrefetchScalarGridSpec(
            num_scalar_prefetch=0,
            grid=(N // Nb,),
            in_specs=[
                pl.BlockSpec((Nb, C, HW), lambda i: (i, 0, 0)),   # x (whole images)
                pl.BlockSpec((Cp, Cp), const2),                   # w1f
                pl.BlockSpec((Cp, 1), const2),                    # b1f
                pl.BlockSpec((Cp, 9), const2),                    # wdwf
                pl.BlockSpec((9, HW), const2),                    # tap masks
                pl.BlockSpec((Cp, Cp), const2),                   # w2f
                pl.BlockSpec((Cp, 1), const2),                    # b3f
            ],
            out_specs=pl.BlockSpec((Nb, C, HW), lambda i: (i, 0, 0)),
        ),
        compiler_params=pltpu.CompilerParams(
            dimension_semantics=("parallel",)),
    )(x_flat, w1f, b1f, wdwf, tap_masks, w2f, b3f)

    return out_flat.reshape(N, C, H, W)


# ---------------------------------------------------------------------------
# Pure-JAX reference (NCHW, mirrors the PyTorch module in eval mode)
# ---------------------------------------------------------------------------
def _reference_forward(x, params):
    N, C, H, W = x.shape
    Cp = C // 2
    x1, x2 = x[:, :Cp], x[:, Cp:]

    def bn(v, p):
        g, b, m, var = p
        s = g / jnp.sqrt(var + 1e-5)
        return v * s[None, :, None, None] + (b - m * s)[None, :, None, None]

    y = jnp.einsum('oi,nihw->nohw', params["w1"][:, :, 0, 0], x2)
    y = jnp.maximum(bn(y, params["bn1"]), 0.0)
    y = lax.conv_general_dilated(
        y, params["wdw"], window_strides=(1, 1), padding=((1, 1), (1, 1)),
        feature_group_count=Cp, dimension_numbers=('NCHW', 'OIHW', 'NCHW'))
    y = bn(y, params["bn2"])
    y = jnp.einsum('oi,nihw->nohw', params["w2"][:, :, 0, 0], y)
    y = jnp.maximum(bn(y, params["bn3"]), 0.0)

    cat = jnp.concatenate([x1, y], axis=1)
    idx = jnp.arange(C).reshape(C // 2, 2).T.reshape(-1)
    return jnp.take(cat, idx, axis=1)


if __name__ == "__main__":
    key = jax.random.PRNGKey(0)
    N, C, H, W = 2, 8, 16, 16        # inplanes = planes = 8, stride = 1, no downsample
    Cp = C // 2

    keys = jax.random.split(key, 8)
    x = jax.random.normal(keys[0], (N, C, H, W), jnp.float32)

    def bn_params(k, c):
        k1, k2, k3, k4 = jax.random.split(k, 4)
        gamma = 1.0 + 0.1 * jax.random.normal(k1, (c,), jnp.float32)
        beta = 0.1 * jax.random.normal(k2, (c,), jnp.float32)
        mean = 0.1 * jax.random.normal(k3, (c,), jnp.float32)
        var = 0.5 + jnp.abs(jax.random.normal(k4, (c,), jnp.float32))
        return (gamma, beta, mean, var)

    params = {
        "w1": 0.2 * jax.random.normal(keys[1], (Cp, Cp, 1, 1), jnp.float32),
        "bn1": bn_params(keys[2], Cp),
        "wdw": 0.2 * jax.random.normal(keys[3], (Cp, 1, 3, 3), jnp.float32),
        "bn2": bn_params(keys[4], Cp),
        "w2": 0.2 * jax.random.normal(keys[5], (Cp, Cp, 1, 1), jnp.float32),
        "bn3": bn_params(keys[6], Cp),
    }

    out = shufflenet_unit_forward(x, params)
    out = jax.block_until_ready(out)

    ref = _reference_forward(x, params)
    assert out.shape == (N, C, H, W), out.shape
    assert jnp.allclose(out, ref, atol=1e-4, rtol=1e-4), float(jnp.max(jnp.abs(out - ref)))

    print("KERNEL_OK")
</pallas_src>

<mosaic_0001>
module attributes {stable_mosaic.version = 11 : i64} {
  func.func @_unit_kernel(%arg0: i32, %arg1: memref<1x8x256xf32, #tpu.memory_space<vmem>>, %arg2: memref<4x4xf32, #tpu.memory_space<vmem>>, %arg3: memref<4x1xf32, #tpu.memory_space<vmem>>, %arg4: memref<4x9xf32, #tpu.memory_space<vmem>>, %arg5: memref<9x256xf32, #tpu.memory_space<vmem>>, %arg6: memref<4x4xf32, #tpu.memory_space<vmem>>, %arg7: memref<4x1xf32, #tpu.memory_space<vmem>>, %arg8: memref<1x8x256xf32, #tpu.memory_space<vmem>>) attributes {dimension_semantics = [#tpu.dimension_semantics<parallel>], iteration_bounds = array<i64: 2>, scalar_prefetch = 0 : i64, scratch_operands = 0 : i64, tpu.core_type = #tpu.core_type<tc>, window_params = [{transform_indices = @transform_0, window_bounds = array<i64: 1, 8, 256>}, {pipeline_mode = #tpu.pipeline_mode<synchronous>, transform_indices = @transform_1, window_bounds = array<i64: 4, 4>}, {pipeline_mode = #tpu.pipeline_mode<synchronous>, transform_indices = @transform_2, window_bounds = array<i64: 4, 1>}, {pipeline_mode = #tpu.pipeline_mode<synchronous>, transform_indices = @transform_3, window_bounds = array<i64: 4, 9>}, {pipeline_mode = #tpu.pipeline_mode<synchronous>, transform_indices = @transform_4, window_bounds = array<i64: 9, 256>}, {pipeline_mode = #tpu.pipeline_mode<synchronous>, transform_indices = @transform_5, window_bounds = array<i64: 4, 4>}, {pipeline_mode = #tpu.pipeline_mode<synchronous>, transform_indices = @transform_6, window_bounds = array<i64: 4, 1>}, {transform_indices = @transform_7, window_bounds = array<i64: 1, 8, 256>}]} {
    %c0 = arith.constant 0 : index
    %c0_0 = arith.constant 0 : index
    %0 = vector.load %arg2[%c0, %c0_0] : memref<4x4xf32, #tpu.memory_space<vmem>>, vector<4x4xf32>
    %c0_1 = arith.constant 0 : index
    %c0_2 = arith.constant 0 : index
    %1 = vector.load %arg3[%c0_1, %c0_2] : memref<4x1xf32, #tpu.memory_space<vmem>>, vector<4x1xf32>
    %c0_3 = arith.constant 0 : index
    %c0_4 = arith.constant 0 : index
    %2 = vector.load %arg4[%c0_3, %c0_4] : memref<4x9xf32, #tpu.memory_space<vmem>>, vector<4x9xf32>
    %c0_5 = arith.constant 0 : index
    %c0_6 = arith.constant 0 : index
    %3 = vector.load %arg6[%c0_5, %c0_6] : memref<4x4xf32, #tpu.memory_space<vmem>>, vector<4x4xf32>
    %c0_7 = arith.constant 0 : index
    %c0_8 = arith.constant 0 : index
    %4 = vector.load %arg7[%c0_7, %c0_8] : memref<4x1xf32, #tpu.memory_space<vmem>>, vector<4x1xf32>
    %c0_9 = arith.constant 0 : index
    %c0_10 = arith.constant 0 : index
    %5 = vector.load %arg5[%c0_9, %c0_10] : memref<9x256xf32, #tpu.memory_space<vmem>>, vector<9x256xf32>
    %6 = vector.extract_strided_slice %5 {offsets = [0, 0], sizes = [1, 256], strides = [1, 1]} : vector<9x256xf32> to vector<1x256xf32>
    %7 = vector.extract_strided_slice %5 {offsets = [1, 0], sizes = [1, 256], strides = [1, 1]} : vector<9x256xf32> to vector<1x256xf32>
    %8 = vector.extract_strided_slice %5 {offsets = [2, 0], sizes = [1, 256], strides = [1, 1]} : vector<9x256xf32> to vector<1x256xf32>
    %9 = vector.extract_strided_slice %5 {offsets = [3, 0], sizes = [1, 256], strides = [1, 1]} : vector<9x256xf32> to vector<1x256xf32>
    %10 = vector.extract_strided_slice %5 {offsets = [5, 0], sizes = [1, 256], strides = [1, 1]} : vector<9x256xf32> to vector<1x256xf32>
    %11 = vector.extract_strided_slice %5 {offsets = [6, 0], sizes = [1, 256], strides = [1, 1]} : vector<9x256xf32> to vector<1x256xf32>
    %12 = vector.extract_strided_slice %5 {offsets = [7, 0], sizes = [1, 256], strides = [1, 1]} : vector<9x256xf32> to vector<1x256xf32>
    %13 = vector.extract_strided_slice %5 {offsets = [8, 0], sizes = [1, 256], strides = [1, 1]} : vector<9x256xf32> to vector<1x256xf32>
    %14 = vector.extract_strided_slice %2 {offsets = [0, 0], sizes = [4, 1], strides = [1, 1]} : vector<4x9xf32> to vector<4x1xf32>
    %15 = vector.extract_strided_slice %2 {offsets = [0, 1], sizes = [4, 1], strides = [1, 1]} : vector<4x9xf32> to vector<4x1xf32>
    %16 = vector.extract_strided_slice %2 {offsets = [0, 2], sizes = [4, 1], strides = [1, 1]} : vector<4x9xf32> to vector<4x1xf32>
    %17 = vector.extract_strided_slice %2 {offsets = [0, 3], sizes = [4, 1], strides = [1, 1]} : vector<4x9xf32> to vector<4x1xf32>
    %18 = vector.extract_strided_slice %2 {offsets = [0, 4], sizes = [4, 1], strides = [1, 1]} : vector<4x9xf32> to vector<4x1xf32>
    %19 = vector.extract_strided_slice %2 {offsets = [0, 5], sizes = [4, 1], strides = [1, 1]} : vector<4x9xf32> to vector<4x1xf32>
    %20 = vector.extract_strided_slice %2 {offsets = [0, 6], sizes = [4, 1], strides = [1, 1]} : vector<4x9xf32> to vector<4x1xf32>
    %21 = vector.extract_strided_slice %2 {offsets = [0, 7], sizes = [4, 1], strides = [1, 1]} : vector<4x9xf32> to vector<4x1xf32>
    %22 = vector.extract_strided_slice %2 {offsets = [0, 8], sizes = [4, 1], strides = [1, 1]} : vector<4x9xf32> to vector<4x1xf32>
    %c0_11 = arith.constant 0 : index
    %c4 = arith.constant 4 : index
    %c0_12 = arith.constant 0 : index
    %23 = vector.load %arg1[%c0_11, %c4, %c0_12] : memref<1x8x256xf32, #tpu.memory_space<vmem>>, vector<1x4x256xf32>
    %24 = vector.shape_cast %23 : vector<1x4x256xf32> to vector<4x256xf32>
    %25 = vector.extract_strided_slice %0 {offsets = [0, 0], sizes = [4, 1], strides = [1, 1]} : vector<4x4xf32> to vector<4x1xf32>
    %26 = vector.extract_strided_slice %24 {offsets = [0, 0], sizes = [1, 256], strides = [1, 1]} : vector<4x256xf32> to vector<1x256xf32>
    %27 = vector.broadcast %25 : vector<4x1xf32> to vector<4x256xf32>
    %28 = vector.broadcast %26 : vector<1x256xf32> to vector<4x256xf32>
    %29 = arith.mulf %27, %28 : vector<4x256xf32>
    %30 = vector.extract_strided_slice %0 {offsets = [0, 1], sizes = [4, 1], strides = [1, 1]} : vector<4x4xf32> to vector<4x1xf32>
    %31 = vector.extract_strided_slice %24 {offsets = [1, 0], sizes = [1, 256], strides = [1, 1]} : vector<4x256xf32> to vector<1x256xf32>
    %32 = vector.broadcast %30 : vector<4x1xf32> to vector<4x256xf32>
    %33 = vector.broadcast %31 : vector<1x256xf32> to vector<4x256xf32>
    %34 = arith.mulf %32, %33 : vector<4x256xf32>
    %35 = arith.addf %29, %34 : vector<4x256xf32>
    %36 = vector.extract_strided_slice %0 {offsets = [0, 2], sizes = [4, 1], strides = [1, 1]} : vector<4x4xf32> to vector<4x1xf32>
    %37 = vector.extract_strided_slice %24 {offsets = [2, 0], sizes = [1, 256], strides = [1, 1]} : vector<4x256xf32> to vector<1x256xf32>
    %38 = vector.broadcast %36 : vector<4x1xf32> to vector<4x256xf32>
    %39 = vector.broadcast %37 : vector<1x256xf32> to vector<4x256xf32>
    %40 = arith.mulf %38, %39 : vector<4x256xf32>
    %41 = arith.addf %35, %40 : vector<4x256xf32>
    %42 = vector.extract_strided_slice %0 {offsets = [0, 3], sizes = [4, 1], strides = [1, 1]} : vector<4x4xf32> to vector<4x1xf32>
    %43 = vector.extract_strided_slice %24 {offsets = [3, 0], sizes = [1, 256], strides = [1, 1]} : vector<4x256xf32> to vector<1x256xf32>
    %44 = vector.broadcast %42 : vector<4x1xf32> to vector<4x256xf32>
    %45 = vector.broadcast %43 : vector<1x256xf32> to vector<4x256xf32>
    %46 = arith.mulf %44, %45 : vector<4x256xf32>
    %47 = arith.addf %41, %46 : vector<4x256xf32>
    %48 = vector.broadcast %1 : vector<4x1xf32> to vector<4x256xf32>
    %49 = arith.addf %47, %48 : vector<4x256xf32>
    %cst = arith.constant 0.000000e+00 : f32
    %50 = vector.broadcast %cst : f32 to vector<4x256xf32>
    %51 = arith.maximumf %49, %50 : vector<4x256xf32>
    %52 = vector.broadcast %18 : vector<4x1xf32> to vector<4x256xf32>
    %53 = arith.mulf %51, %52 : vector<4x256xf32>
    %c17_i32 = arith.constant 17 : i32
    %54 = tpu.dynamic_rotate %51 by %c17_i32 dim 1 : vector<4x256xf32>, i32 -> vector<4x256xf32>
    %55 = vector.broadcast %6 : vector<1x256xf32> to vector<4x256xf32>
    %56 = arith.mulf %54, %55 : vector<4x256xf32>
    %57 = vector.broadcast %14 : vector<4x1xf32> to vector<4x256xf32>
    %58 = arith.mulf %56, %57 : vector<4x256xf32>
    %59 = arith.addf %53, %58 : vector<4x256xf32>
    %c16_i32 = arith.constant 16 : i32
    %60 = tpu.dynamic_rotate %51 by %c16_i32 dim 1 : vector<4x256xf32>, i32 -> vector<4x256xf32>
    %61 = vector.broadcast %7 : vector<1x256xf32> to vector<4x256xf32>
    %62 = arith.mulf %60, %61 : vector<4x256xf32>
    %63 = vector.broadcast %15 : vector<4x1xf32> to vector<4x256xf32>
    %64 = arith.mulf %62, %63 : vector<4x256xf32>
    %65 = arith.addf %59, %64 : vector<4x256xf32>
    %c15_i32 = arith.constant 15 : i32
    %66 = tpu.dynamic_rotate %51 by %c15_i32 dim 1 : vector<4x256xf32>, i32 -> vector<4x256xf32>
    %67 = vector.broadcast %8 : vector<1x256xf32> to vector<4x256xf32>
    %68 = arith.mulf %66, %67 : vector<4x256xf32>
    %69 = vector.broadcast %16 : vector<4x1xf32> to vector<4x256xf32>
    %70 = arith.mulf %68, %69 : vector<4x256xf32>
    %71 = arith.addf %65, %70 : vector<4x256xf32>
    %c1_i32 = arith.constant 1 : i32
    %72 = tpu.dynamic_rotate %51 by %c1_i32 dim 1 : vector<4x256xf32>, i32 -> vector<4x256xf32>
    %73 = vector.broadcast %9 : vector<1x256xf32> to vector<4x256xf32>
    %74 = arith.mulf %72, %73 : vector<4x256xf32>
    %75 = vector.broadcast %17 : vector<4x1xf32> to vector<4x256xf32>
    %76 = arith.mulf %74, %75 : vector<4x256xf32>
    %77 = arith.addf %71, %76 : vector<4x256xf32>
    %c255_i32 = arith.constant 255 : i32
    %78 = tpu.dynamic_rotate %51 by %c255_i32 dim 1 : vector<4x256xf32>, i32 -> vector<4x256xf32>
    %79 = vector.broadcast %10 : vector<1x256xf32> to vector<4x256xf32>
    %80 = arith.mulf %78, %79 : vector<4x256xf32>
    %81 = vector.broadcast %19 : vector<4x1xf32> to vector<4x256xf32>
    %82 = arith.mulf %80, %81 : vector<4x256xf32>
    %83 = arith.addf %77, %82 : vector<4x256xf32>
    %c241_i32 = arith.constant 241 : i32
    %84 = tpu.dynamic_rotate %51 by %c241_i32 dim 1 : vector<4x256xf32>, i32 -> vector<4x256xf32>
    %85 = vector.broadcast %11 : vector<1x256xf32> to vector<4x256xf32>
    %86 = arith.mulf %84, %85 : vector<4x256xf32>
    %87 = vector.broadcast %20 : vector<4x1xf32> to vector<4x256xf32>
    %88 = arith.mulf %86, %87 : vector<4x256xf32>
    %89 = arith.addf %83, %88 : vector<4x256xf32>
    %c240_i32 = arith.constant 240 : i32
    %90 = tpu.dynamic_rotate %51 by %c240_i32 dim 1 : vector<4x256xf32>, i32 -> vector<4x256xf32>
    %91 = vector.broadcast %12 : vector<1x256xf32> to vector<4x256xf32>
    %92 = arith.mulf %90, %91 : vector<4x256xf32>
    %93 = vector.broadcast %21 : vector<4x1xf32> to vector<4x256xf32>
    %94 = arith.mulf %92, %93 : vector<4x256xf32>
    %95 = arith.addf %89, %94 : vector<4x256xf32>
    %c239_i32 = arith.constant 239 : i32
    %96 = tpu.dynamic_rotate %51 by %c239_i32 dim 1 : vector<4x256xf32>, i32 -> vector<4x256xf32>
    %97 = vector.broadcast %13 : vector<1x256xf32> to vector<4x256xf32>
    %98 = arith.mulf %96, %97 : vector<4x256xf32>
    %99 = vector.broadcast %22 : vector<4x1xf32> to vector<4x256xf32>
    %100 = arith.mulf %98, %99 : vector<4x256xf32>
    %101 = arith.addf %95, %100 : vector<4x256xf32>
    %102 = vector.extract_strided_slice %3 {offsets = [0, 0], sizes = [4, 1], strides = [1, 1]} : vector<4x4xf32> to vector<4x1xf32>
    %103 = vector.extract_strided_slice %101 {offsets = [0, 0], sizes = [1, 256], strides = [1, 1]} : vector<4x256xf32> to vector<1x256xf32>
    %104 = vector.broadcast %102 : vector<4x1xf32> to vector<4x256xf32>
    %105 = vector.broadcast %103 : vector<1x256xf32> to vector<4x256xf32>
    %106 = arith.mulf %104, %105 : vector<4x256xf32>
    %107 = vector.extract_strided_slice %3 {offsets = [0, 1], sizes = [4, 1], strides = [1, 1]} : vector<4x4xf32> to vector<4x1xf32>
    %108 = vector.extract_strided_slice %101 {offsets = [1, 0], sizes = [1, 256], strides = [1, 1]} : vector<4x256xf32> to vector<1x256xf32>
    %109 = vector.broadcast %107 : vector<4x1xf32> to vector<4x256xf32>
    %110 = vector.broadcast %108 : vector<1x256xf32> to vector<4x256xf32>
    %111 = arith.mulf %109, %110 : vector<4x256xf32>
    %112 = arith.addf %106, %111 : vector<4x256xf32>
    %113 = vector.extract_strided_slice %3 {offsets = [0, 2], sizes = [4, 1], strides = [1, 1]} : vector<4x4xf32> to vector<4x1xf32>
    %114 = vector.extract_strided_slice %101 {offsets = [2, 0], sizes = [1, 256], strides = [1, 1]} : vector<4x256xf32> to vector<1x256xf32>
    %115 = vector.broadcast %113 : vector<4x1xf32> to vector<4x256xf32>
    %116 = vector.broadcast %114 : vector<1x256xf32> to vector<4x256xf32>
    %117 = arith.mulf %115, %116 : vector<4x256xf32>
    %118 = arith.addf %112, %117 : vector<4x256xf32>
    %119 = vector.extract_strided_slice %3 {offsets = [0, 3], sizes = [4, 1], strides = [1, 1]} : vector<4x4xf32> to vector<4x1xf32>
    %120 = vector.extract_strided_slice %101 {offsets = [3, 0], sizes = [1, 256], strides = [1, 1]} : vector<4x256xf32> to vector<1x256xf32>
    %121 = vector.broadcast %119 : vector<4x1xf32> to vector<4x256xf32>
    %122 = vector.broadcast %120 : vector<1x256xf32> to vector<4x256xf32>
    %123 = arith.mulf %121, %122 : vector<4x256xf32>
    %124 = arith.addf %118, %123 : vector<4x256xf32>
    %125 = vector.broadcast %4 : vector<4x1xf32> to vector<4x256xf32>
    %126 = arith.addf %124, %125 : vector<4x256xf32>
    %cst_13 = arith.constant 0.000000e+00 : f32
    %127 = vector.broadcast %cst_13 : f32 to vector<4x256xf32>
    %128 = arith.maximumf %126, %127 : vector<4x256xf32>
    %c0_14 = arith.constant 0 : index
    %c0_15 = arith.constant 0 : index
    %c0_16 = arith.constant 0 : index
    %129 = vector.load %arg1[%c0_14, %c0_15, %c0_16] : memref<1x8x256xf32, #tpu.memory_space<vmem>>, vector<1x1x256xf32>
    %130 = vector.shape_cast %129 : vector<1x1x256xf32> to vector<1x256xf32>
    %c0_17 = arith.constant 0 : index
    %c0_18 = arith.constant 0 : index
    %c0_19 = arith.constant 0 : index
    %131 = vector.load %arg8[%c0_17, %c0_18, %c0_19] : memref<1x8x256xf32, #tpu.memory_space<vmem>>, vector<1x1x256xf32>
    %132 = vector.shape_cast %131 : vector<1x1x256xf32> to vector<1x256xf32>
    %133 = vector.shape_cast %130 : vector<1x256xf32> to vector<1x1x256xf32>
    tpu.vector_store %arg8[%c0_17, %c0_18, %c0_19], %133 {strides = array<i32>} : memref<1x8x256xf32, #tpu.memory_space<vmem>>, vector<1x1x256xf32>,
    %c0_20 = arith.constant 0 : index
    %c2 = arith.constant 2 : index
    %c0_21 = arith.constant 0 : index
    %134 = vector.load %arg1[%c0_20, %c2, %c0_21] : memref<1x8x256xf32, #tpu.memory_space<vmem>>, vector<1x1x256xf32>
    %135 = vector.shape_cast %134 : vector<1x1x256xf32> to vector<1x256xf32>
    %c0_22 = arith.constant 0 : index
    %c1 = arith.constant 1 : index
    %c0_23 = arith.constant 0 : index
    %136 = vector.load %arg8[%c0_22, %c1, %c0_23] : memref<1x8x256xf32, #tpu.memory_space<vmem>>, vector<1x1x256xf32>
    %137 = vector.shape_cast %136 : vector<1x1x256xf32> to vector<1x256xf32>
    %138 = vector.shape_cast %135 : vector<1x256xf32> to vector<1x1x256xf32>
    tpu.vector_store %arg8[%c0_22, %c1, %c0_23], %138 {strides = array<i32>} : memref<1x8x256xf32, #tpu.memory_space<vmem>>, vector<1x1x256xf32>,
    %139 = vector.extract_strided_slice %128 {offsets = [0, 0], sizes = [1, 256], strides = [1, 1]} : vector<4x256xf32> to vector<1x256xf32>
    %c0_24 = arith.constant 0 : index
    %c2_25 = arith.constant 2 : index
    %c0_26 = arith.constant 0 : index
    %140 = vector.load %arg8[%c0_24, %c2_25, %c0_26] : memref<1x8x256xf32, #tpu.memory_space<vmem>>, vector<1x1x256xf32>
    %141 = vector.shape_cast %140 : vector<1x1x256xf32> to vector<1x256xf32>
    %142 = vector.shape_cast %139 : vector<1x256xf32> to vector<1x1x256xf32>
    tpu.vector_store %arg8[%c0_24, %c2_25, %c0_26], %142 {strides = array<i32>} : memref<1x8x256xf32, #tpu.memory_space<vmem>>, vector<1x1x256xf32>,
    %143 = vector.extract_strided_slice %128 {offsets = [2, 0], sizes = [1, 256], strides = [1, 1]} : vector<4x256xf32> to vector<1x256xf32>
    %c0_27 = arith.constant 0 : index
    %c3 = arith.constant 3 : index
    %c0_28 = arith.constant 0 : index
    %144 = vector.load %arg8[%c0_27, %c3, %c0_28] : memref<1x8x256xf32, #tpu.memory_space<vmem>>, vector<1x1x256xf32>
    %145 = vector.shape_cast %144 : vector<1x1x256xf32> to vector<1x256xf32>
    %146 = vector.shape_cast %143 : vector<1x256xf32> to vector<1x1x256xf32>
    tpu.vector_store %arg8[%c0_27, %c3, %c0_28], %146 {strides = array<i32>} : memref<1x8x256xf32, #tpu.memory_space<vmem>>, vector<1x1x256xf32>,
    %c0_29 = arith.constant 0 : index
    %c1_30 = arith.constant 1 : index
    %c0_31 = arith.constant 0 : index
    %147 = vector.load %arg1[%c0_29, %c1_30, %c0_31] : memref<1x8x256xf32, #tpu.memory_space<vmem>>, vector<1x1x256xf32>
    %148 = vector.shape_cast %147 : vector<1x1x256xf32> to vector<1x256xf32>
    %c0_32 = arith.constant 0 : index
    %c4_33 = arith.constant 4 : index
    %c0_34 = arith.constant 0 : index
    %149 = vector.load %arg8[%c0_32, %c4_33, %c0_34] : memref<1x8x256xf32, #tpu.memory_space<vmem>>, vector<1x1x256xf32>
    %150 = vector.shape_cast %149 : vector<1x1x256xf32> to vector<1x256xf32>
    %151 = vector.shape_cast %148 : vector<1x256xf32> to vector<1x1x256xf32>
    tpu.vector_store %arg8[%c0_32, %c4_33, %c0_34], %151 {strides = array<i32>} : memref<1x8x256xf32, #tpu.memory_space<vmem>>, vector<1x1x256xf32>,
    %c0_35 = arith.constant 0 : index
    %c3_36 = arith.constant 3 : index
    %c0_37 = arith.constant 0 : index
    %152 = vector.load %arg1[%c0_35, %c3_36, %c0_37] : memref<1x8x256xf32, #tpu.memory_space<vmem>>, vector<1x1x256xf32>
    %153 = vector.shape_cast %152 : vector<1x1x256xf32> to vector<1x256xf32>
    %c0_38 = arith.constant 0 : index
    %c5 = arith.constant 5 : index
    %c0_39 = arith.constant 0 : index
    %154 = vector.load %arg8[%c0_38, %c5, %c0_39] : memref<1x8x256xf32, #tpu.memory_space<vmem>>, vector<1x1x256xf32>
    %155 = vector.shape_cast %154 : vector<1x1x256xf32> to vector<1x256xf32>
    %156 = vector.shape_cast %153 : vector<1x256xf32> to vector<1x1x256xf32>
    tpu.vector_store %arg8[%c0_38, %c5, %c0_39], %156 {strides = array<i32>} : memref<1x8x256xf32, #tpu.memory_space<vmem>>, vector<1x1x256xf32>,
    %157 = vector.extract_strided_slice %128 {offsets = [1, 0], sizes = [1, 256], strides = [1, 1]} : vector<4x256xf32> to vector<1x256xf32>
    %c0_40 = arith.constant 0 : index
    %c6 = arith.constant 6 : index
    %c0_41 = arith.constant 0 : index
    %158 = vector.load %arg8[%c0_40, %c6, %c0_41] : memref<1x8x256xf32, #tpu.memory_space<vmem>>, vector<1x1x256xf32>
    %159 = vector.shape_cast %158 : vector<1x1x256xf32> to vector<1x256xf32>
    %160 = vector.shape_cast %157 : vector<1x256xf32> to vector<1x1x256xf32>
    tpu.vector_store %arg8[%c0_40, %c6, %c0_41], %160 {strides = array<i32>} : memref<1x8x256xf32, #tpu.memory_space<vmem>>, vector<1x1x256xf32>,
    %161 = vector.extract_strided_slice %128 {offsets = [3, 0], sizes = [1, 256], strides = [1, 1]} : vector<4x256xf32> to vector<1x256xf32>
    %c0_42 = arith.constant 0 : index
    %c7 = arith.constant 7 : index
    %c0_43 = arith.constant 0 : index
    %162 = vector.load %arg8[%c0_42, %c7, %c0_43] : memref<1x8x256xf32, #tpu.memory_space<vmem>>, vector<1x1x256xf32>
    %163 = vector.shape_cast %162 : vector<1x1x256xf32> to vector<1x256xf32>
    %164 = vector.shape_cast %161 : vector<1x256xf32> to vector<1x1x256xf32>
    tpu.vector_store %arg8[%c0_42, %c7, %c0_43], %164 {strides = array<i32>} : memref<1x8x256xf32, #tpu.memory_space<vmem>>, vector<1x1x256xf32>,
    return
  }
  func.func @transform_0(%arg0: i32) -> (i32, i32, i32) {
    %c0_i32 = arith.constant 0 : i32
    %c0_i32_0 = arith.constant 0 : i32
    %c0_i32_1 = arith.constant 0 : i32
    return %arg0, %c0_i32, %c0_i32_0 : i32, i32, i32
  }
  func.func @transform_1(%arg0: i32) -> (i32, i32) {
    %c0_i32 = arith.constant 0 : i32
    %c0_i32_0 = arith.constant 0 : i32
    %c0_i32_1 = arith.constant 0 : i32
    return %c0_i32, %c0_i32_0 : i32, i32
  }
  func.func @transform_2(%arg0: i32) -> (i32, i32) {
    %c0_i32 = arith.constant 0 : i32
    %c0_i32_0 = arith.constant 0 : i32
    %c0_i32_1 = arith.constant 0 : i32
    return %c0_i32, %c0_i32_0 : i32, i32
  }
  func.func @transform_3(%arg0: i32) -> (i32, i32) {
    %c0_i32 = arith.constant 0 : i32
    %c0_i32_0 = arith.constant 0 : i32
    %c0_i32_1 = arith.constant 0 : i32
    return %c0_i32, %c0_i32_0 : i32, i32
  }
  func.func @transform_4(%arg0: i32) -> (i32, i32) {
    %c0_i32 = arith.constant 0 : i32
    %c0_i32_0 = arith.constant 0 : i32
    %c0_i32_1 = arith.constant 0 : i32
    return %c0_i32, %c0_i32_0 : i32, i32
  }
  func.func @transform_5(%arg0: i32) -> (i32, i32) {
    %c0_i32 = arith.constant 0 : i32
    %c0_i32_0 = arith.constant 0 : i32
    %c0_i32_1 = arith.constant 0 : i32
    return %c0_i32, %c0_i32_0 : i32, i32
  }
  func.func @transform_6(%arg0: i32) -> (i32, i32) {
    %c0_i32 = arith.constant 0 : i32
    %c0_i32_0 = arith.constant 0 : i32
    %c0_i32_1 = arith.constant 0 : i32
    return %c0_i32, %c0_i32_0 : i32, i32
  }
  func.func @transform_7(%arg0: i32) -> (i32, i32, i32) {
    %c0_i32 = arith.constant 0 : i32
    %c0_i32_0 = arith.constant 0 : i32
    %c0_i32_1 = arith.constant 0 : i32
    return %arg0, %c0_i32, %c0_i32_0 : i32, i32, i32
  }
}

</mosaic_0001>

<bundles_post_ra>
// kernel: tpu_custom_call.1
= control target key start
LH: loop header
LB: loop body
LE: loop exit
PB: predicated region body
PF: predicated region fallthrough
CT: control target
= control target key end

     0   :  { %s1518_s0 = inlined_call_operand.hbm [shape: f32[2,8,256], index: 0, kind: input, shape index: {}]   ;;  %s1519_s1 = inlined_call_operand.vmem [shape: f32[4,4], index: 1, kind: input, shape index: {}]   ;;  %s1520_s2 = inlined_call_operand.vmem [shape: f32[4,1], index: 2, kind: input, shape index: {}]   ;;  %s1521_s3 = inlined_call_operand.vmem [shape: f32[4,9], index: 3, kind: input, shape index: {}]   ;;  %s1522_s4 = inlined_call_operand.hbm [shape: f32[9,256], index: 4, kind: input, shape index: {}]   ;;  %s1523_s5 = inlined_call_operand.vmem [shape: f32[4,4], index: 5, kind: input, shape index: {}]   ;;  %s1524_s6 = inlined_call_operand.vmem [shape: f32[4,1], index: 6, kind: input, shape index: {}]   ;;  %s1525_s7 = inlined_call_operand.hbm [shape: f32[2,8,256], index: 7, kind: output, shape index: {}]  }
   0x1   :  { %1530 = sst [smem:[#allocation12_spill]] %s1522_s4 }
   0x2   :  { %12 = vsyncpa [#allocation3], 0 }
   0x3   :  { %14 = vsyncpa [#allocation3 + $0x1], 0 }
   0x4   :  { %15 = vsyncpa [#allocation6], 0 }
   0x5   :  { %16 = vsyncpa [#allocation4], 0 }
   0x6   :  { %18 = vsyncpa [#allocation4 + $0x1], 0  ;;  %s1146_s24 = smov 0   ;;  %s1148_s25 = smov 0  }
   0x7   :  { %s1150_s26 = smov 0   ;;  %s1152_s27 = smov 0  }
   0x8 LB: > { %s1167_s28 = sadd.s32 4294967295, %s1081_s27   ;;  %s834_s29 = sadd.s32 4294967294, %s1081_s27   ;;  %s1081_s27 = sphi %s1152_s27, %s1553_s27   ;;  %s1077_s26 = sphi %s1150_s26, %s1552_s26   ;;  %s1073_s25 = sphi %s1148_s25, %s1551_s25   ;;  %s1069_s24 = sphi %s1146_s24, %s1550_s24  }
   0x9   : > { %p44_p0 = scmp.ne.s32.totalorder %s1073_s25, %s1069_s24  ;;  %p1526_p1 = scmp.eq.s32.totalorder %s1167_s28, 0 }
   0xa   : > { %p200_p3 = scmp.eq.s32.totalorder %s834_s29, 1  ;;  %p835_p5 = scmp.ge.s32.totalorder %s1081_s27, 1 }
   0xb   : > { %p1176_p4 = por %p1526_p1, %p44_p0  ;;  %p207_p7 = scmp.lt.s32.totalorder %s1081_s27, 3 }
   0xc   : > { %p1181_p6 = por %p200_p3, %p44_p0  ;;  %s1083_s10 = smov [#allocation5]  }
   0xd   : > { %s1531_s30 = scalar_select %p1176_p4, 1, 0 }
   0xe   : > { %s1532_s8 = scalar_select %p1181_p6, 1, 0 }
   0xf   : > { %p1186_p8 = pnand %p835_p5, %p207_p7  ;;  %s228_s11 = sshll.u32 %s1083_s10, 4  ;;  %s229_s11 = int_to_ptr.vmem [resolvable:$true] %s228_s11 }
  0x10   : > { %s1200_s13 = sadd.s32 1, %s1081_s27   ;;  %s31_s14 = sadd.s32 1, %s1077_s26 }
  0x11   : > { %s1533_s9 = scalar_select %p1186_p8, 1, 0 }
  0x12   : > { %p872_p9 = pneg %p1186_p8  ;;  %s28_s15 = ssub.s32 %s1081_s27, %s1200_s13 }
  0x13   : > { %s970_s16 = scalar_lea.vmem %s229_s11, 512  ;;  %p978_p5 = scmp.lt.s32.totalorder %s229_s11, %s229_s11 }
  0x14   : > { %p1195_p11 = pnand %p872_p9, %p1526_p1  ;;  %p971_p13 = scmp.ne.s32.totalorder %s229_s11, %s970_s16 }
  0x15   : > { %p979_p7 = scmp.lt.s32.totalorder %s970_s16, %s970_s16 }
  0x16   : > { %p961_p12 = pneg %p1195_p11 }
  0x17   : > { %p980_p10 = por %p979_p7, %p978_p5 }
  0x18   : > { %p973_p0 = pnand %p971_p13, %p961_p12 }
  0x1a   : > { %p974_p3 = pneg %p973_p0 }
  0x1c   : > { %p981_p2 = pnand %p980_p10, %p974_p3 }
  0x1e   : > { %984 = shalt.err (!%p981_p2)
}
  0x1f   : > { %s1084_s17 = smov 256   ;;  %s1085_s18 = smov 16  }
  0x20   : > { %s1535_s4 = sld [smem:[#allocation12_spill]]  ;;  %p29_p9 = scmp.eq.s32.totalorder %s28_s15, 0 }
  0x21   : > { %p38_p12 = scmp.ne.s32.totalorder %s1077_s26, %s1073_s25  ;;  %p39_p10 = scmp.eq.s32.totalorder %s1081_s27, 0 }
  0x22   : > { %p885_p2 = scmp.lt.s32.totalorder %s1081_s27, 2  ;;  %p1537_p0 = scmp.eq.s32.totalorder %s1167_s28, 1 }
  0x23   : > { %s1217_s21 = scalar_select %p29_p9, %s1077_s26, %s31_s14  }
  0x24   : > { %p40_p13 = por %p39_p10, %p38_p12  ;;  %p1221_p3 = por %p1537_p0, %p38_p12 }
  0x25   : > { %1536 = sst [smem:[#allocation11_spill]] %s1217_s21  ;;  %s248_s23 = sand.u32 1, %s1077_s26  }
  0x26   : > { %875 = dma.hbm_to_vmem [thread:$0]  (!%p1195_p11), %s1535_s4, 512, %s229_s11, [#allocation6], %s1084_s17, %s1084_s17, %s1085_s18  }
  0x27   : > { %s1538_s22 = scalar_select %p1221_p3, 1, 0 }
  0x28   : > { %s862_s29 = sshll.u32 %s1081_s27, 8  ;;  %s838_s10 = sshll.u32 %s248_s23, 4 }
  0x29   : > { %s1230_s19 = scalar_lea.hbm %s1518_s0, %s862_s29  ;;  %s252_s11 = scalar_lea.vmem [#allocation2], %s838_s10 }
  0x2a   : > { %s260_s14 = sshll.u32 %s252_s11, 4  ;;  %p1232_p11 = pnand %p885_p2, %p40_p13  ;;  %s261_s14 = int_to_ptr.vmem [resolvable:$true] %s260_s14 }
  0x2b   : > { %s249_s17 = scalar_lea.sflag [#allocation3], %s248_s23  ;;  %s985_s18 = scalar_lea.hbm %s1230_s19, 256 }
  0x2c   : > { %p986_p5 = scmp.ne.s32.totalorder %s1230_s19, %s985_s18  ;;  %p987_p7 = pneg %p1232_p11 }
  0x2d   : > { %s990_s12 = scalar_lea.hbm %s1518_s0, 512  ;;  %p991_p10 = scmp.lt.s32.totalorder %s1230_s19, %s1518_s0 }
  0x2e   : > { %p988_p9 = pnand %p987_p7, %p986_p5  ;;  %p992_p2 = scmp.lt.s32.totalorder %s990_s12, %s985_s18 }
  0x30   : > { %p989_p12 = pneg %p988_p9  ;;  %p993_p13 = por %p992_p2, %p991_p10 }
  0x32   : > { %p994_p0 = pnand %p993_p13, %p989_p12 }
  0x34   : > { %997 = shalt.err (!%p994_p0)
}
  0x35   : > { %s998_s11 = scalar_lea.vmem %s261_s14, 256  ;;  %s1086_s23 = smov [#allocation2]  }
  0x36   : > { %p999_p1 = scmp.ne.s32.totalorder %s261_s14, %s998_s11  ;;  %s1003_s4 = sshll.u32 %s1086_s23, 4  ;;  %s1004_s4 = int_to_ptr.vmem [resolvable:$false] %s1003_s4 }
  0x37   : > { %s1005_s21 = scalar_lea.vmem %s1004_s4, 512  ;;  %p1006_p5 = scmp.lt.s32.totalorder %s261_s14, %s1004_s4 }
  0x38   : > { %p1001_p6 = pnand %p999_p1, %p987_p7  ;;  %p1007_p9 = scmp.lt.s32.totalorder %s1005_s21, %s998_s11 }
  0x3a   : > { %p1002_p3 = pneg %p1001_p6  ;;  %p1008_p4 = por %p1007_p9, %p1006_p5 }
  0x3c   : > { %p1009_p8 = pnand %p1008_p4, %p1002_p3 }
  0x3e   : > { %1012 = shalt.err (!%p1009_p8)
}
  0x3f   : > { %879 = dma.hbm_to_vmem [thread:$0]  (!%p1232_p11), %s1230_s19, 256, %s261_s14, %s249_s17  }
  0x40   : > { %p1540_p12 = scmp.ne.s32.totalorder %s1533_s9, 0 }
  0x41   : > { %s1253_s18 = sand.u32 (!%p1540_p12), 1, %s1073_s25   ;;  %p1541_p1 = scmp.ne.s32.totalorder (!%p1540_p12), %s1531_s30, 0 }
  0x42   : > { %269 = sbr.rel (%p1540_p12) target bundleno = 436 (0x1b4), region = 48  ;;  %s842_s20 = sshll.u32 (!%p1540_p12), %s1253_s18, 4 }
  0x43   : > { %s272_s4 = scalar_lea.sflag (!%p1540_p12), [#allocation3], %s1253_s18  ;;  %s1259_s21 = scalar_lea.vmem (!%p1540_p12), [#allocation2], %s842_s20 }
  0x47   : > { %1056 = dma.done.wait (%p1541_p1), %s272_s4, 256  }
  0x48   : > { %1058 = vsyncadd (%p1541_p1), %s272_s4, 4294967040  ;;  %p1542_p4 = scmp.eq.s32.totalorder %s1167_s28, 0 }
  0x4a   : > { %1060 = dma.done.wait (%p1542_p4), [#allocation6], 512   ;;  %p1543_p6 = pmov %p1542_p4 }
  0x4b   : > { %v1087_v0 = vmov 2   ;;  %v1088_v1 = vmov 0   ;;  %v310_v2 = vld [vmem:[%s1519_s1] sm:$0xf]  ;;  %v1089_v3 = vmov 3   ;;  %v1090_v4 = vmov 1  }
  0x4c   : > { %1062 = vsyncadd (%p1543_p6), [#allocation6], 4294966784  ;;  %943 = vset.pattern.permute.xlu1 %v1087_v0  ;;  %941 = vset.pattern.permute.xlu0 %v1088_v1  ;;  %v311_v5 = vld [vmem:[%s1520_s2] sm:$0xf]  ;;  %v1091_v7 = vmov 4   ;;  %v1092_v8 = vmov 5   ;;  %v326_v12 = vlaneseq }
  0x4d   : > { %353 = vperm.xlu1 %943, %v310_v2   ;;  %323 = vperm.xlu0 %941, %v310_v2   ;;  %v1282_v6 = vld [vmem:[%s1521_s3] sm:$0xf]  ;;  %v1093_v9 = vmov 6   ;;  %v1094_v10 = vmov 7   ;;  %v1095_v11 = vmov 8   ;;  %s1096_s29 = smov 17  }
  0x4e   : > { %v1295_v13 = vshrl.u32 %v326_v12, 7  ;;  %v319_v16 = vld [vmem:[%s1259_s21] sm:$0xf0]  ;;  %v320_v17 = vld [vmem:[%s1259_s21 + $0x8] sm:$0xf0]  ;;  %s1097_s12 = smov 16  }
  0x4f   : > { %s1098_s16 = smov 15   ;;  %v313_v51 = vld [vmem:[%s1523_s5] sm:$0xf]  ;;  %s1099_s23 = smov 1   ;;  %vm1348_vm0 = vcmp.lt.s32.totalorder %v326_v12, 256 }
  0x50   : > { %v328_v14 = vsub.s32 4, %v1295_v13  ;;  %v1299_v15 = vsub.s32 5, %v1295_v13  ;;  %v1304_v18 = vsub.s32 6, %v1295_v13  ;;  %v1307_v20 = vsub.s32 7, %v1295_v13  ;;  %s1100_s4 = smov 127   ;;  %s1101_s9 = smov 113  }
  0x51   : > { %944 = vset.pattern.permute.xlu1 %v1089_v3  ;;  %942 = vset.pattern.permute.xlu0 %v1090_v4  ;;  %s1102_s19 = smov 112   ;;  %s1103_s30 = smov 111   ;;  %v314_v52 = vld [vmem:[%s1524_s6] sm:$0xf] }
  0x52   : > { %369 = vperm.xlu1 %944, %v310_v2   ;;  %337 = vperm.xlu0 %942, %v310_v2   ;;  %v329_v22 = vrot.slane %v319_v16, %v328_v14  ;;  %v333_v23 = vrot.slane %v320_v17, %v328_v14  ;;  %v343_v24 = vrot.slane %v319_v16, %v1299_v15  ;;  %v674_v54 = vld [vmem:[%s1259_s21] ss:$8 sm:$0x3]  ;;  %v847_v55 = vld [vmem:[%s1259_s21 + $0x2] ss:$8 sm:$0x3] }
  0x53   : > { %v347_v25 = vrot.slane %v320_v17, %v1299_v15  ;;  %v359_v26 = vrot.slane %v319_v16, %v1304_v18  ;;  %v363_v27 = vrot.slane %v320_v17, %v1304_v18  ;;  %v375_v28 = vrot.slane %v319_v16, %v1307_v20  ;;  %s1356_s17 = scalar_lea.vmem [#allocation7], %s842_s20  ;;  %v851_v56 = vld [vmem:[%s1259_s21 + $0x1] ss:$8 sm:$0x3]  ;;  %s863_s20 = sshll.u32 %s1167_s28, 8 }
  0x54   : > { %v379_v29 = vrot.slane %v320_v17, %v1307_v20  ;;  %679 = vst.msk [vmem:[%s1356_s17] ss:$8 sm:$0x3] %vm1348_vm0, %v674_v54  ;;  %848 = vst.msk [vmem:[%s1356_s17 + $0x1] ss:$8 sm:$0x3] %vm1348_vm0, %v847_v55 }
  0x55   : > { %v853_v57 = vld [vmem:[%s1259_s21 + $0x3] ss:$8 sm:$0x3]  ;;  %852 = vst.msk [vmem:[%s1356_s17 + $0x4] ss:$8 sm:$0x3] %vm1348_vm0, %v851_v56 }
  0x56   : > { %945 = vset.pattern.permute.xlu1 %v1088_v1  ;;  %946 = vset.pattern.permute.xlu0 %v1091_v7  ;;  %854 = vst.msk [vmem:[%s1356_s17 + $0x5] ss:$8 sm:$0x3] %vm1348_vm0, %v853_v57  ;;  %v1386_v14 = vsub.s32 0, %v1295_v13  ;;  %v1388_v16 = vld [vmem:[#allocation5] sm:$0xff]  ;;  %v1390_v17 = vld [vmem:[#allocation5 + $0x8] sm:$0xff] }
  0x57   : > { %386 = vperm.xlu1 %945, %v311_v5   ;;  %395 = vperm.xlu0 %946, %v1282_v6   ;;  %v537_v55 = vrot.slane %v1388_v16, %v1304_v18  ;;  %s754_s21 = sshll.u32 %s1356_s17, 4  ;;  %s740_s28 = scalar_lea.sflag [#allocation4], %s1253_s18  ;;  %s755_s21 = int_to_ptr.vmem [resolvable:$true] %s754_s21 }
  0x58   : > { %s1013_s10 = scalar_lea.vmem %s755_s21, 256  ;;  %p1546_p3 = scmp.ne.s32.totalorder %s1538_s22, 0 }
  0x59   : > { %p1014_p8 = scmp.ne.s32.totalorder %s755_s21, %s1013_s10  ;;  %s1105_s11 = smov [#allocation7]  }
  0x5b   : > { %420 = vperm.xlu1 %945, %v1282_v6   ;;  %948 = vset.pattern.permute.xlu0 %v1087_v0  ;;  %p1015_p11 = pnand %p1014_p8, %p1546_p3 }
  0x5c   : > { %470 = vperm.xlu0 %948, %v1282_v6  }
  0x5d   : > { %p1016_p7 = pneg %p1015_p11 }
  0x5f   : > { %947 = vset.pattern.permute.xlu1 %v1090_v4 }
  0x60   : > { %949 = vset.pattern.permute.xlu0 %v1089_v3  ;;  %445 = vperm.xlu1 %947, %v1282_v6  }
  0x61   : > { %495 = vperm.xlu0 %949, %v1282_v6  }
  0x65   : > { %950 = vset.pattern.permute.xlu0 %v1092_v8 }
  0x66   : > { %520 = vperm.xlu0 %950, %v1282_v6  }
  0x6a   : > { %951 = vset.pattern.permute.xlu0 %v1093_v9  ;;  %v1383_v9 = vand.u32 127, %v326_v12  ;;  %v416_v12 = vrot.slane %v1390_v17, %v1386_v14 }
  0x6b   : > { %545 = vperm.xlu0 %951, %v1282_v6  }
  0x6c   : > { %vm406_vm1 = vcmp.lt.s32.totalorder %v1383_v9, 17  ;;  %vm431_vm2 = vcmp.lt.s32.totalorder %v1383_v9, 16  ;;  %vm456_vm3 = vcmp.lt.s32.totalorder %v1383_v9, 15  ;;  %vm481_vm4 = vcmp.lt.s32.totalorder %v1383_v9, 1 }
  0x6d   : > { %vm506_vm5 = vcmp.lt.s32.totalorder %v1383_v9, 127  ;;  %vm531_vm6 = vcmp.lt.s32.totalorder %v1383_v9, 113  ;;  %vm556_vm7 = vcmp.lt.s32.totalorder %v1383_v9, 112  ;;  %vm581_vm8 = vcmp.lt.s32.totalorder %v1383_v9, 111 }
  0x6f   : > { %952 = vset.pattern.permute.xlu0 %v1094_v10 }
  0x70   : > { %570 = vperm.xlu0 %952, %v1282_v6  }
  0x74   : > { %953 = vset.pattern.permute.xlu0 %v1095_v11 }
  0xc8   : > { %v324_v19 = vpop.permute.xlu0 %323  ;;  %v354_v21 = vpop.permute.xlu1 %353 }
  0xc9   : > { %v334_v31 = vmul.f32 %v329_v22, %v324_v19  ;;  %v335_v32 = vmul.f32 %v333_v23, %v324_v19  ;;  %v364_v35 = vmul.f32 %v359_v26, %v354_v21  ;;  %v365_v36 = vmul.f32 %v363_v27, %v354_v21 }
  0xca   : > { %v1394_v19 = vsub.s32 1, %v1295_v13  ;;  %v412_v22 = vrot.slane %v1388_v16, %v1386_v14  ;;  %v1405_v27 = vsub.s32 3, %v1295_v13 }
  0xcd   : > { %v338_v30 = vpop.permute.xlu0 %337  ;;  %v370_v37 = vpop.permute.xlu1 %369 }
  0xce   : > { %v348_v33 = vmul.f32 %v343_v24, %v338_v30  ;;  %v349_v34 = vmul.f32 %v347_v25, %v338_v30  ;;  %v380_v40 = vmul.f32 %v375_v28, %v370_v37  ;;  %v381_v41 = vmul.f32 %v379_v29, %v370_v37 }
  0xcf   : > { %v1402_v24 = vsub.s32 2, %v1295_v13  ;;  %v437_v28 = vrot.slane %v1388_v16, %v1394_v19  ;;  %v441_v29 = vrot.slane %v1390_v17, %v1394_v19 }
  0xd0   : > { %v350_v38 = vadd.f32 %v348_v33, %v334_v31  ;;  %v351_v39 = vadd.f32 %v349_v34, %v335_v32 }
  0xd2   : > { %v366_v42 = vadd.f32 %v364_v35, %v350_v38  ;;  %v367_v43 = vadd.f32 %v365_v36, %v351_v39  ;;  %v387_v46 = vpop.permute.xlu1 %386  ;;  %v396_v59 = vpop.permute.xlu0 %395  ;;  %v462_v35 = vrot.slane %v1388_v16, %v1402_v24  ;;  %v466_v36 = vrot.slane %v1390_v17, %v1402_v24 }
  0xd3   : > { %v487_v39 = vrot.slane %v1388_v16, %v1405_v27 }
  0xd4   : > { %v382_v44 = vadd.f32 %v380_v40, %v366_v42  ;;  %v383_v45 = vadd.f32 %v381_v41, %v367_v43 }
  0xd6   : > { %v389_v47 = vadd.f32 %v387_v46, %v382_v44  ;;  %v390_v48 = vadd.f32 %v387_v46, %v383_v45  ;;  %v421_v58 = vpop.permute.xlu1 %420  ;;  %v491_v44 = vrot.slane %v1390_v17, %v1405_v27  ;;  %v512_v45 = vrot.slane %v1388_v16, %v1299_v15 }
  0xd7   : > { %v1372_v61 = vpop.permute.xlu0 %470  ;;  %v516_v46 = vrot.slane %v1390_v17, %v1299_v15 }
  0xd8   : > { %v1315_v49 = vmax.f32 %v389_v47, 0.0  ;;  %v1317_v50 = vmax.f32 %v390_v48, 0.0 }
  0xda   : > { %402 = vrot.lane.b32.xlu0 %v1317_v50, %s1096_s29  ;;  %400 = vrot.lane.b32.xlu1 %v1315_v49, %s1096_s29  ;;  %v398_v37 = vmul.f32 %v396_v59, %v1315_v49  ;;  %v399_v38 = vmul.f32 %v396_v59, %v1317_v50  ;;  %v541_v59 = vrot.slane %v1390_v17, %v1304_v18 }
  0xdb   : > { %v446_v60 = vpop.permute.xlu1 %445 }
  0xdc   : > { %v1374_v63 = vpop.permute.xlu0 %495 }
  0xde   : > { %427 = vrot.lane.b32.xlu0 %v1315_v49, %s1097_s12  ;;  %429 = vrot.lane.b32.xlu1 %v1317_v50, %s1097_s12 }
  0xe1   : > { %v1376_v2 = vpop.permute.xlu0 %520 }
  0xe2   : > { %452 = vrot.lane.b32.xlu1 %v1315_v49, %s1098_s16  ;;  %595 = vperm.xlu0 %953, %v1282_v6  }
  0xe6   : > { %454 = vrot.lane.b32.xlu1 %v1317_v50, %s1098_s16  ;;  %954 = vset.pattern.permute.xlu0 %v1088_v1  ;;  %v1378_v4 = vpop.permute.xlu0 %545  ;;  %s752_s16 = scalar_lea.hbm %s1525_s7, %s863_s20 }
  0xe7   : > { %604 = vperm.xlu0 %954, %v313_v51  }
  0xea   : > { %477 = vrot.lane.b32.xlu1 %v1315_v49, %s1099_s23 }
  0xeb   : > { %956 = vset.pattern.permute.xlu0 %v1089_v3  ;;  %v1380_v7 = vpop.permute.xlu0 %570 }
  0xec   : > { %650 = vperm.xlu0 %956, %v313_v51  }
  0xee   : > { %479 = vrot.lane.b32.xlu1 %v1317_v50, %s1099_s23  ;;  %s1017_s23 = sshll.u32 %s1105_s11, 4  ;;  %s1018_s23 = int_to_ptr.vmem [resolvable:$false] %s1017_s23 }
  0xef   : > { %p1020_p10 = scmp.lt.s32.totalorder %s755_s21, %s1018_s23 }
  0xf0   : > { %958 = vset.pattern.permute.xlu0 %v1088_v1 }
  0xf2   : > { %502 = vrot.lane.b32.xlu1 %v1315_v49, %s1100_s4 }
  0xf6   : > { %504 = vrot.lane.b32.xlu1 %v1317_v50, %s1100_s4  ;;  %s1019_s4 = scalar_lea.vmem %s1018_s23, 512 }
  0xf7   : > { %p1021_p2 = scmp.lt.s32.totalorder %s1019_s4, %s1013_s10 }
  0xf9   : > { %p1022_p13 = por %p1021_p2, %p1020_p10 }
  0xfa   : > { %527 = vrot.lane.b32.xlu1 %v1315_v49, %s1101_s9 }
  0xfb   : > { %p1023_p0 = pnand %p1022_p13, %p1016_p7 }
  0xfe   : > { %529 = vrot.lane.b32.xlu1 %v1317_v50, %s1101_s9 }
 0x102   : > { %552 = vrot.lane.b32.xlu1 %v1315_v49, %s1102_s19 }
 0x106   : > { %554 = vrot.lane.b32.xlu1 %v1317_v50, %s1102_s19 }
 0x10a   : > { %577 = vrot.lane.b32.xlu1 %v1315_v49, %s1103_s30 }
 0x10e   : > { %579 = vrot.lane.b32.xlu1 %v1317_v50, %s1103_s30 }
 0x112   : > { %618 = vperm.xlu1 %947, %v313_v51  }
 0x116   : > { %955 = vset.pattern.permute.xlu1 %v1087_v0 }
 0x117   : > { %634 = vperm.xlu1 %955, %v313_v51  }
 0x11b   : > { %957 = vset.pattern.permute.xlu1 %v1088_v1 }
 0x11c   : > { %667 = vperm.xlu1 %957, %v314_v52  }
 0x14c   : > { %v401_v62 = vpop.permute.xlu1 %400  ;;  %v403_v10 = vpop.permute.xlu0 %402 }
 0x14d   : > { %v407_v25 = vsel %vm406_vm1, %v401_v62, %v403_v10  ;;  %v408_v26 = vsel %vm406_vm1, %v403_v10, %v401_v62 }
 0x14e   : > { %v417_v33 = vmul.f32 %v412_v22, %v408_v26  ;;  %v418_v34 = vmul.f32 %v416_v12, %v407_v25 }
 0x150   : > { %v430_v0 = vpop.permute.xlu1 %429  ;;  %v428_v23 = vpop.permute.xlu0 %427  ;;  %v423_v48 = vmul.f32 %v421_v58, %v417_v33  ;;  %v424_v49 = vmul.f32 %v421_v58, %v418_v34 }
 0x151   : > { %v432_v30 = vsel %vm431_vm2, %v428_v23, %v430_v0  ;;  %v433_v31 = vsel %vm431_vm2, %v430_v0, %v428_v23 }
 0x152   : > { %v442_v40 = vmul.f32 %v437_v28, %v433_v31  ;;  %v443_v41 = vmul.f32 %v441_v29, %v432_v30 }
 0x154   : > { %v453_v1 = vpop.permute.xlu1 %452  ;;  %v448_v56 = vmul.f32 %v446_v60, %v442_v40  ;;  %v449_v57 = vmul.f32 %v446_v60, %v443_v41  ;;  %v566_v60 = vrot.slane %v1390_v17, %v1307_v20 }
 0x158   : > { %v455_v3 = vpop.permute.xlu1 %454 }
 0x159   : > { %v457_v42 = vsel %vm456_vm3, %v453_v1, %v455_v3  ;;  %v458_v43 = vsel %vm456_vm3, %v455_v3, %v453_v1  ;;  %v425_v3 = vadd.f32 %v423_v48, %v398_v37 }
 0x15a   : > { %v467_v52 = vmul.f32 %v462_v35, %v458_v43  ;;  %v468_v54 = vmul.f32 %v466_v36, %v457_v42  ;;  %v846_v35 = vld [vmem:[#allocation5 + $0x18] ss:$0 sm:$0xff] }
 0x15c   : > { %v478_v5 = vpop.permute.xlu1 %477  ;;  %v473_v18 = vmul.f32 %v1372_v61, %v467_v52  ;;  %v474_v10 = vmul.f32 %v1372_v61, %v468_v54 }
 0x160   : > { %v480_v6 = vpop.permute.xlu1 %479 }
 0x161   : > { %v482_v50 = vsel %vm481_vm4, %v478_v5, %v480_v6  ;;  %v483_v51 = vsel %vm481_vm4, %v480_v6, %v478_v5  ;;  %v426_v5 = vadd.f32 %v424_v49, %v399_v38  ;;  %v562_v6 = vrot.slane %v1388_v16, %v1307_v20 }
 0x162   : > { %v492_v15 = vmul.f32 %v487_v39, %v483_v51  ;;  %v493_v62 = vmul.f32 %v491_v44, %v482_v50 }
 0x164   : > { %v503_v8 = vpop.permute.xlu1 %502  ;;  %v498_v26 = vmul.f32 %v1374_v63, %v492_v15  ;;  %v499_v16 = vmul.f32 %v1374_v63, %v493_v62  ;;  %v845_v63 = vld [vmem:[#allocation5 + $0x10] ss:$0 sm:$0xff] }
 0x168   : > { %v505_v11 = vpop.permute.xlu1 %504 }
 0x169   : > { %v507_v58 = vsel %vm506_vm5, %v503_v8, %v505_v11  ;;  %v508_v0 = vsel %vm506_vm5, %v505_v11, %v503_v8  ;;  %v450_v8 = vadd.f32 %v448_v56, %v425_v3  ;;  %v451_v11 = vadd.f32 %v449_v57, %v426_v5 }
 0x16a   : > { %v517_v23 = vmul.f32 %v512_v45, %v507_v58  ;;  %v518_v25 = vmul.f32 %v516_v46, %v508_v0 }
 0x16b   : > { %v475_v30 = vadd.f32 %v473_v18, %v450_v8  ;;  %v476_v31 = vadd.f32 %v474_v10, %v451_v11 }
 0x16c   : > { %v528_v21 = vpop.permute.xlu1 %527 }
 0x16d   : > { %v500_v36 = vadd.f32 %v498_v26, %v475_v30  ;;  %v501_v37 = vadd.f32 %v499_v16, %v476_v31 }
 0x170   : > { %v530_v32 = vpop.permute.xlu1 %529 }
 0x171   : > { %v532_v22 = vsel %vm531_vm6, %v528_v21, %v530_v32  ;;  %v533_v12 = vsel %vm531_vm6, %v530_v32, %v528_v21  ;;  %v523_v21 = vmul.f32 %v1376_v2, %v517_v23  ;;  %v524_v32 = vmul.f32 %v1376_v2, %v518_v25 }
 0x172   : > { %v542_v28 = vmul.f32 %v537_v55, %v532_v22  ;;  %v543_v29 = vmul.f32 %v541_v59, %v533_v12 }
 0x173   : > { %v525_v9 = vadd.f32 %v523_v21, %v500_v36  ;;  %v526_v45 = vadd.f32 %v524_v32, %v501_v37 }
 0x174   : > { %v553_v47 = vpop.permute.xlu1 %552  ;;  %v548_v39 = vmul.f32 %v1378_v4, %v542_v28  ;;  %v549_v40 = vmul.f32 %v1378_v4, %v543_v29 }
 0x176   : > { %v550_v48 = vadd.f32 %v548_v39, %v525_v9  ;;  %v551_v49 = vadd.f32 %v549_v40, %v526_v45 }
 0x178   : > { %v555_v1 = vpop.permute.xlu1 %554 }
 0x179   : > { %v557_v20 = vsel %vm556_vm7, %v553_v47, %v555_v1  ;;  %v558_v61 = vsel %vm556_vm7, %v555_v1, %v553_v47  ;;  %v596_v47 = vpop.permute.xlu0 %595 }
 0x17a   : > { %v567_v33 = vmul.f32 %v562_v6, %v557_v20  ;;  %v568_v34 = vmul.f32 %v566_v60, %v558_v61 }
 0x17c   : > { %v578_v17 = vpop.permute.xlu1 %577  ;;  %v573_v46 = vmul.f32 %v1380_v7, %v567_v33  ;;  %v574_v2 = vmul.f32 %v1380_v7, %v568_v34 }
 0x17d   : > { %v605_v4 = vpop.permute.xlu0 %604 }
 0x17e   : > { %v575_v52 = vadd.f32 %v573_v46, %v550_v48  ;;  %v576_v54 = vadd.f32 %v574_v2, %v551_v49 }
 0x180   : > { %v580_v38 = vpop.permute.xlu1 %579 }
 0x181   : > { %v582_v41 = vsel %vm581_vm8, %v578_v17, %v580_v38  ;;  %v583_v42 = vsel %vm581_vm8, %v580_v38, %v578_v17  ;;  %v651_v10 = vpop.permute.xlu0 %650 }
 0x182   : > { %v592_v43 = vmul.f32 %v845_v63, %v582_v41  ;;  %v593_v44 = vmul.f32 %v846_v35, %v583_v42 }
 0x184   : > { %v598_v50 = vmul.f32 %v596_v47, %v592_v43  ;;  %v599_v51 = vmul.f32 %v596_v47, %v593_v44 }
 0x186   : > { %v600_v55 = vadd.f32 %v598_v50, %v575_v52  ;;  %v601_v56 = vadd.f32 %v599_v51, %v576_v54 }
 0x188   : > { %v610_v57 = vrot.slane %v600_v55, %v1386_v14  ;;  %v614_v59 = vrot.slane %v601_v56, %v1386_v14  ;;  %v624_v62 = vrot.slane %v600_v55, %v1394_v19  ;;  %v628_v58 = vrot.slane %v601_v56, %v1394_v19 }
 0x189   : > { %v656_v1 = vrot.slane %v600_v55, %v1405_v27  ;;  %v660_v3 = vrot.slane %v601_v56, %v1405_v27  ;;  %v640_v60 = vrot.slane %v600_v55, %v1402_v24  ;;  %v644_v18 = vrot.slane %v601_v56, %v1402_v24 }
 0x18a   : > { %v615_v5 = vmul.f32 %v610_v57, %v605_v4  ;;  %v616_v6 = vmul.f32 %v614_v59, %v605_v4  ;;  %v1104_v14 = vmov 1966171168  }
 0x18b   : > { %v690_v12 = vunpack.c.l.s4 %v1104_v14  ;;  %v661_v25 = vmul.f32 %v656_v1, %v651_v10  ;;  %v662_v26 = vmul.f32 %v660_v3, %v651_v10 }
 0x18d   : > { %v619_v15 = vpop.permute.xlu1 %618  ;;  %v691_v20 = vunpack.c.0.s8 %v690_v12 }
 0x18e   : > { %v629_v7 = vmul.f32 %v624_v62, %v619_v15  ;;  %v630_v0 = vmul.f32 %v628_v58, %v619_v15 }
 0x18f   : > { %v694_v30 = vsub.s32 %v691_v20, %v1295_v13 }
 0x190   : > { %v631_v8 = vadd.f32 %v629_v7, %v615_v5  ;;  %v632_v11 = vadd.f32 %v630_v0, %v616_v6 }
 0x192   : > { %v635_v22 = vpop.permute.xlu1 %634 }
 0x193   : > { %v645_v23 = vmul.f32 %v640_v60, %v635_v22  ;;  %v646_v19 = vmul.f32 %v644_v18, %v635_v22 }
 0x195   : > { %v647_v16 = vadd.f32 %v645_v23, %v631_v8  ;;  %v648_v27 = vadd.f32 %v646_v19, %v632_v11 }
 0x197   : > { %v668_v61 = vpop.permute.xlu1 %667  ;;  %v663_v17 = vadd.f32 %v661_v25, %v647_v16  ;;  %v664_v24 = vadd.f32 %v662_v26, %v648_v27 }
 0x199   : > { %v670_v28 = vadd.f32 %v668_v61, %v663_v17  ;;  %v671_v29 = vadd.f32 %v668_v61, %v664_v24 }
 0x19b   : > { %v672_v31 = vmax.f32 %v670_v28, 0.0  ;;  %v673_v21 = vmax.f32 %v671_v29, 0.0 }
 0x19d   : > { %v688_v32 = vcombine.low %v672_v31, %v673_v21 }
 0x19f   : > { %v695_v33 = vrot.slane %v688_v32, %v694_v30 }
 0x1a1   : > { %v702_v34 = vrot.slane %v695_v33, %v694_v30  ;;  %v722_v63 = vcombine.high %v695_v33, %v695_v33 }
 0x1a3   : > { %849 = vst.msk [vmem:[%s1356_s17 + $0x2] ss:$8 sm:$0x3] %vm1348_vm0, %v702_v34  ;;  %v707_v35 = vcombine.high %v702_v34, %v702_v34  ;;  %v729_v36 = vrot.slane %v722_v63, %v694_v30 }
 0x1a5   : > { %850 = vst.msk [vmem:[%s1356_s17 + $0x3] ss:$8 sm:$0x3] %vm1348_vm0, %v707_v35  ;;  %855 = vst.msk [vmem:[%s1356_s17 + $0x6] ss:$8 sm:$0x3] %vm1348_vm0, %v729_v36  ;;  %v734_v13 = vcombine.high %v729_v36, %v729_v36 }
 0x1a7   : > { %856 = vst.msk [vmem:[%s1356_s17 + $0x7] ss:$8 sm:$0x3] %vm1348_vm0, %v734_v13 }
 0x1a8   : > { %1026 = shalt.err (!%p1023_p0)
}
 0x1a9   : > { %s1027_s9 = scalar_lea.hbm %s752_s16, 256  ;;  %s1031_s30 = scalar_lea.hbm %s1525_s7, 512 }
 0x1aa   : > { %p1028_p5 = scmp.ne.s32.totalorder %s752_s16, %s1027_s9  ;;  %p1032_p1 = scmp.lt.s32.totalorder %s752_s16, %s1525_s7 }
 0x1ab   : > { %p1033_p4 = scmp.lt.s32.totalorder %s1031_s30, %s1027_s9 }
 0x1ac   : > { %p1029_p9 = pnand %p1028_p5, %p1546_p3 }
 0x1ad   : > { %p1034_p6 = por %p1033_p4, %p1032_p1 }
 0x1ae   : > { %p1030_p12 = pneg %p1029_p9 }
 0x1b0   : > { %p1035_p8 = pnand %p1034_p6, %p1030_p12 }
 0x1b2   : > { %1038 = shalt.err (!%p1035_p8)
}
 0x1b3   : > { %870 = dma.vmem_to_hbm [thread:$0]  (%p1546_p3), %s755_s21, 256, %s752_s16, %s740_s28  }
 0x1b4 PF: > { %s766_s17 = sand.u32 1, %s1069_s24   ;;  %p1547_p11 = scmp.ne.s32.totalorder %s1532_s8, 0 }
 0x1b5   : > { %p1548_p7 = scmp.ge.s32.totalorder %s1081_s27, 2  ;;  %s767_s20 = scalar_lea.sflag [#allocation4], %s766_s17 }
 0x1b7   : > { %p881_p10 = pnand %p1548_p7, %p1547_p11 }
 0x1b9   : > { %p882_p2 = pneg %p881_p10 }
 0x1bb   : > { %1064 = dma.done.wait (%p882_p2), %s767_s20, 256  }
 0x1bc   : > { %1066 = vsyncadd (%p882_p2), %s767_s20, 4294967040  ;;  %s1549_s29 = sld [smem:[#allocation11_spill]]  ;;  %p21_p13 = scmp.ge.s32.totalorder %s1200_s13, 4  }
 0x1bd   : > { %s1550_s24 = smov %s1073_s25  ;;  %s1551_s25 = smov %s1077_s26 }
 0x1be   : > { %s1553_s27 = smov %s1200_s13  ;;  %23 = sbr.rel (!%p21_p13) target bundleno = 8 (0x8), region = 107 }
 0x1c2   : > { %s1552_s26 = smov %s1549_s29 }
 0x1c3   :  { %772 = vsyncpa [#allocation3], 1 }
 0x1c4   :  { %774 = vsyncpa [#allocation3 + $0x1], 1 }
 0x1c5   :  { %775 = vsyncpa [#allocation6], 1 }
 0x1c6   :  { %776 = vsyncpa [#allocation4], 1 }
 0x1c7   :  { %778 = vsyncpa [#allocation4 + $0x1], 1 }

</bundles_post_ra>
